<compile_context>
chip_gen: v6e
topology: v6e:2x2x1
jax: 0.10.0
libtpu: 0.0.40
codegen_flags: <defaults>
</compile_context>

<pallas_src>
import functools

import jax
import jax.numpy as jnp
from jax.experimental import pallas as pl
from jax.experimental.pallas import tpu as pltpu


# 48 MiB: safe on v7x (64 MiB physical VMEM per TC) and plenty for v5e/v6e; the actual
# double-buffered tile footprints below stay well under 8 MiB.
_VMEM_LIMIT = 48 * 1024 * 1024


def _tile(dim, target, align):
    """Largest tile <= target that divides dim and is a multiple of `align`.

    Falls back to the full dim (untiled axis) when no aligned divisor exists, which keeps the
    (8,128) BlockSpec constraint satisfied for any shape.
    """
    if dim <= target:
        return dim
    t = (min(target, dim) // align) * align
    while t >= align:
        if dim % t == 0:
            return t
        t -= align
    return dim


# ----------------- fused LayerNorm + matmul (+GELU), LN cached per M-tile -----------------

def _ln_matmul_kernel(x_ref, g_ref, b_ref, w_ref, bias_ref, o_ref, h_ref, *, eps, activation):
    # LN math in f32, bf16 operands into the MXU, f32 accumulation.
    # LN is computed only for the first N-tile of each M-tile and cached in h_ref (VMEM scratch),
    # then reused for every other N-tile (N grid axis is "arbitrary" so the scratch carries).
    @pl.when(pl.program_id(1) == 0)
    def _():
        x = x_ref[...].astype(jnp.float32)
        mean = jnp.mean(x, axis=-1, keepdims=True)
        xc = x - mean
        var = jnp.mean(xc * xc, axis=-1, keepdims=True)
        h = xc * jax.lax.rsqrt(var + eps) * g_ref[...].astype(jnp.float32) \
            + b_ref[...].astype(jnp.float32)
        h_ref[...] = h.astype(h_ref.dtype)

    y = jnp.dot(h_ref[...], w_ref[...], preferred_element_type=jnp.float32)
    y = y + bias_ref[...].astype(jnp.float32)
    if activation == "gelu":
        # PyTorch nn.GELU default is exact (erf) GELU.
        y = jax.nn.gelu(y, approximate=False)
    o_ref[...] = y.astype(o_ref.dtype)


def ln_matmul_bias(x, gamma, beta, w, bias, activation="none", eps=1e-5,
                   tm=512, tn=512):
    # x: [M, K], w: [K, N] (full K per block -- K is the model width, small), bias: [N]
    M, K = x.shape
    _, N = w.shape
    tm = _tile(M, tm, 8)      # sublane-aligned
    tn = _tile(N, tn, 128)    # lane-aligned
    return pl.pallas_call(
        functools.partial(_ln_matmul_kernel, eps=eps, activation=activation),
        out_shape=jax.ShapeDtypeStruct((M, N), x.dtype),
        grid=(M // tm, N // tn),
        in_specs=[
            pl.BlockSpec((tm, K), lambda i, j: (i, 0)),
            pl.BlockSpec((1, K), lambda i, j: (0, 0)),
            pl.BlockSpec((1, K), lambda i, j: (0, 0)),
            pl.BlockSpec((K, tn), lambda i, j: (0, j)),
            pl.BlockSpec((1, tn), lambda i, j: (0, j)),
        ],
        out_specs=pl.BlockSpec((tm, tn), lambda i, j: (i, j)),
        scratch_shapes=[pltpu.VMEM((tm, K), w.dtype)],
        compiler_params=pltpu.CompilerParams(
            dimension_semantics=("parallel", "arbitrary"),
            vmem_limit_bytes=_VMEM_LIMIT),
    )(x, gamma.reshape(1, K), beta.reshape(1, K), w, bias.reshape(1, N))


# ------------------ K-tiled matmul + bias + residual (f32 accumulator) -----------------

def _matmul_res_kernel(x_ref, w_ref, bias_ref, res_ref, o_ref, acc_ref):
    @pl.when(pl.program_id(2) == 0)
    def _():
        acc_ref[...] = jnp.zeros_like(acc_ref)

    acc_ref[...] += jnp.dot(x_ref[...], w_ref[...], preferred_element_type=jnp.float32)

    @pl.when(pl.program_id(2) == pl.num_programs(2) - 1)
    def _():
        y = acc_ref[...] + bias_ref[...].astype(jnp.float32) + res_ref[...].astype(jnp.float32)
        o_ref[...] = y.astype(o_ref.dtype)


def matmul_bias_residual(x, w, bias, res, tm=512, tn=1024, tk=512):
    # x: [M, K], w: [K, N], bias: [N], res: [M, N] (residual stream, added once at last K step)
    M, K = x.shape
    _, N = w.shape
    tm = _tile(M, tm, 8)
    tn = _tile(N, tn, 128)
    tk = _tile(K, tk, 128)
    return pl.pallas_call(
        _matmul_res_kernel,
        out_shape=jax.ShapeDtypeStruct((M, N), res.dtype),
        grid=(M // tm, N // tn, K // tk),
        in_specs=[
            pl.BlockSpec((tm, tk), lambda i, j, k: (i, k)),
            pl.BlockSpec((tk, tn), lambda i, j, k: (k, j)),
            pl.BlockSpec((1, tn), lambda i, j, k: (0, j)),
            pl.BlockSpec((tm, tn), lambda i, j, k: (i, j)),
        ],
        out_specs=pl.BlockSpec((tm, tn), lambda i, j, k: (i, j)),
        scratch_shapes=[pltpu.VMEM((tm, tn), jnp.float32)],
        compiler_params=pltpu.CompilerParams(
            dimension_semantics=("parallel", "parallel", "arbitrary"),
            vmem_limit_bytes=_VMEM_LIMIT),
    )(x, w, bias.reshape(1, N), res)


# --------------- causal attention (all heads) + fused out-proj + residual ---------------

def _attn_out_kernel(q_ref, k_ref, v_ref, wo_ref, bo_ref, res_ref, o_ref, *,
                     heads, head_dim, scale):
    # q_ref/k_ref/v_ref: (1, S, D) column slabs sliced straight out of the QKV tensor.
    S = q_ref.shape[1]
    q = q_ref[0]
    k = k_ref[0]
    v = v_ref[0]
    # causal mask built once per batch element
    rows = jax.lax.broadcasted_iota(jnp.int32, (S, S), 0)
    cols = jax.lax.broadcasted_iota(jnp.int32, (S, S), 1)
    causal = cols <= rows
    outs = []
    for h in range(heads):                      # static unroll over all heads
        lo = h * head_dim
        qh = q[:, lo:lo + head_dim]
        kh = k[:, lo:lo + head_dim]
        vh = v[:, lo:lo + head_dim]
        s = jax.lax.dot_general(qh, kh, (((1,), (1,)), ((), ())),
                                preferred_element_type=jnp.float32) * scale
        s = jnp.where(causal, s, -1e30)         # in-kernel causal mask, f32
        m = jnp.max(s, axis=-1, keepdims=True)
        e = jnp.exp(s - m)
        p = e * pl.reciprocal(jnp.sum(e, axis=-1, keepdims=True), approx=True)
        outs.append(jnp.dot(p.astype(vh.dtype), vh, preferred_element_type=jnp.float32))
    attn = (outs[0] if heads == 1 else jnp.concatenate(outs, axis=-1)).astype(wo_ref.dtype)
    # fused out-projection + bias + residual epilogue (w_o is resident: constant index_map)
    y = jnp.dot(attn, wo_ref[...], preferred_element_type=jnp.float32)
    y = y + bo_ref[...].astype(jnp.float32) + res_ref[0].astype(jnp.float32)
    o_ref[0] = y.astype(o_ref.dtype)            # one lane-dense store per block


def attention_block(qkv, x_res, w_o, b_o, num_heads):
    # qkv: [B, S, 3*D]; q/k/v are read directly as D-wide (lane-dense) column slabs via
    # BlockSpec index_maps, so no XLA reshape/transpose of heads is needed.
    # x_res: [B, S, D] residual stream; output is attention + out-proj + bias + residual.
    B, S, threeD = qkv.shape
    D = threeD // 3
    head_dim = D // num_heads
    scale = float(head_dim) ** -0.5
    return pl.pallas_call(
        functools.partial(_attn_out_kernel, heads=num_heads, head_dim=head_dim, scale=scale),
        out_shape=jax.ShapeDtypeStruct((B, S, D), x_res.dtype),
        grid=(B,),
        in_specs=[
            pl.BlockSpec((1, S, D), lambda b: (b, 0, 0)),       # Q columns
            pl.BlockSpec((1, S, D), lambda b: (b, 0, 1)),       # K columns
            pl.BlockSpec((1, S, D), lambda b: (b, 0, 2)),       # V columns
            pl.BlockSpec((D, D), lambda b: (0, 0)),             # w_o, resident across grid
            pl.BlockSpec((1, D), lambda b: (0, 0)),             # b_o
            pl.BlockSpec((1, S, D), lambda b: (b, 0, 0)),       # residual
        ],
        out_specs=pl.BlockSpec((1, S, D), lambda b: (b, 0, 0)),
        compiler_params=pltpu.CompilerParams(
            dimension_semantics=("parallel",),
            vmem_limit_bytes=_VMEM_LIMIT),
    )(qkv, qkv, qkv, w_o, b_o.reshape(1, D), x_res)


# ------------------- final LayerNorm + text projection + L2 normalize -------------------

def _ln_proj_norm_kernel(x_ref, g_ref, b_ref, w_ref, o_ref, *, eps):
    x = x_ref[...].astype(jnp.float32)
    mean = jnp.mean(x, axis=-1, keepdims=True)
    xc = x - mean
    var = jnp.mean(xc * xc, axis=-1, keepdims=True)
    h = xc * jax.lax.rsqrt(var + eps) * g_ref[...].astype(jnp.float32) \
        + b_ref[...].astype(jnp.float32)
    y = jnp.dot(h.astype(w_ref.dtype), w_ref[...], preferred_element_type=jnp.float32)
    y = y * jax.lax.rsqrt(jnp.sum(y * y, axis=-1, keepdims=True) + 1e-12)
    o_ref[...] = y.astype(o_ref.dtype)


def ln_proj_normalize(x, gamma, beta, w, eps=1e-5):
    # x: [B, D] (pooled EOT features), w: [D, E]. Tiny -- single block is fine.
    B, D = x.shape
    _, E = w.shape
    return pl.pallas_call(
        functools.partial(_ln_proj_norm_kernel, eps=eps),
        out_shape=jax.ShapeDtypeStruct((B, E), jnp.float32),
        grid=(1,),
        in_specs=[
            pl.BlockSpec((B, D), lambda i: (0, 0)),
            pl.BlockSpec((1, D), lambda i: (0, 0)),
            pl.BlockSpec((1, D), lambda i: (0, 0)),
            pl.BlockSpec((D, E), lambda i: (0, 0)),
        ],
        out_specs=pl.BlockSpec((B, E), lambda i: (0, 0)),
        compiler_params=pltpu.CompilerParams(
            dimension_semantics=("arbitrary",),
            vmem_limit_bytes=_VMEM_LIMIT),
    )(x, gamma.reshape(1, D), beta.reshape(1, D), w)


# ------------------------------------ model ------------------------------------

def init_params(key, *, vocab, seq, width, heads, layers, embed_dim,
                compute_dtype=jnp.bfloat16):
    keys = jax.random.split(key, 8 + 8 * layers)
    k = iter(keys)
    p = {
        "num_heads": heads,
        # embeddings / LN params / biases stay f32; matmul weights stored bf16 (MXU operands).
        "token_embedding": 0.02 * jax.random.normal(next(k), (vocab, width), jnp.float32),
        "positional_embedding": 0.01 * jax.random.normal(next(k), (seq, width), jnp.float32),
        "ln_final_g": jnp.ones((width,), jnp.float32),
        "ln_final_b": jnp.zeros((width,), jnp.float32),
        "text_projection": (0.02 * jax.random.normal(next(k), (width, embed_dim),
                                                     jnp.float32)).astype(compute_dtype),
        "layers": [],
    }
    hidden = 4 * width
    for _ in range(layers):
        p["layers"].append({
            "ln1_g": jnp.ones((width,), jnp.float32),
            "ln1_b": jnp.zeros((width,), jnp.float32),
            "w_qkv": (0.02 * jax.random.normal(next(k), (width, 3 * width),
                                               jnp.float32)).astype(compute_dtype),
            "b_qkv": jnp.zeros((3 * width,), jnp.float32),
            "w_o": (0.02 * jax.random.normal(next(k), (width, width),
                                             jnp.float32)).astype(compute_dtype),
            "b_o": jnp.zeros((width,), jnp.float32),
            "ln2_g": jnp.ones((width,), jnp.float32),
            "ln2_b": jnp.zeros((width,), jnp.float32),
            "w_fc": (0.02 * jax.random.normal(next(k), (width, hidden),
                                              jnp.float32)).astype(compute_dtype),
            "b_fc": jnp.zeros((hidden,), jnp.float32),
            "w_proj": (0.02 * jax.random.normal(next(k), (hidden, width),
                                                jnp.float32)).astype(compute_dtype),
            "b_proj": jnp.zeros((width,), jnp.float32),
        })
    return p


def encode_text(params, tokens, compute_dtype=jnp.bfloat16):
    """CLIP text-tower forward (what OpenClipWrapper.encode() runs per batch)."""
    B, S0 = tokens.shape
    D = params["token_embedding"].shape[1]
    H = params["num_heads"]
    assert D % 128 == 0 and D % H == 0, "width must be 128-lane aligned and divisible by heads"

    # EOT position from the ORIGINAL (unpadded) tokens (highest token id, as CLIP does)
    eot = jnp.argmax(tokens, axis=-1)

    # embedding gather + positional embedding (glue), then pad the sequence to a multiple of 16
    # (bf16 sublane packing); padded keys are causally masked for every real query and padded
    # query rows are dropped at EOT pooling.
    # TODO(synk): for production CLIP (S=77) pad to 128 for fully full-vreg attention blocks.
    S = ((S0 + 15) // 16) * 16
    x = params["token_embedding"][tokens] + params["positional_embedding"][None, :S0, :]
    if S != S0:
        x = jnp.pad(x, ((0, 0), (0, S - S0), (0, 0)))
    x = x.astype(compute_dtype)                         # bf16 residual stream / MXU operands

    for layer in params["layers"]:
        xf = x.reshape(B * S, D)
        # --- pre-LN multi-head causal self-attention + residual
        #     (LN fused into the QKV matmul and cached per M-tile; out-projection, bias and
        #      residual fused into the attention kernel epilogue) ---
        qkv = ln_matmul_bias(xf, layer["ln1_g"], layer["ln1_b"],
                             layer["w_qkv"], layer["b_qkv"])                 # [B*S, 3D]
        x = attention_block(qkv.reshape(B, S, 3 * D), x,
                            layer["w_o"], layer["b_o"], H)                   # [B, S, D]

        # --- pre-LN MLP (exact GELU) + residual (LN+GELU fused into FC matmul,
        #     residual fused into the K-tiled down-projection matmul) ---
        xf = x.reshape(B * S, D)
        h = ln_matmul_bias(xf, layer["ln2_g"], layer["ln2_b"],
                           layer["w_fc"], layer["b_fc"], activation="gelu")  # [B*S, 4D]
        x = matmul_bias_residual(h, layer["w_proj"], layer["b_proj"], xf).reshape(B, S, D)

    # pool at the EOT token first (LN is per-row so it commutes with the gather),
    # then fused final-LN + text projection + L2 normalize.
    pooled = x[jnp.arange(B), eot]                      # [B, D]
    return ln_proj_normalize(pooled, params["ln_final_g"], params["ln_final_b"],
                             params["text_projection"])  # [B, E] f32


if __name__ == "__main__":
    # small, TPU-tile-friendly shapes consistent with the text tower
    B, S = 2, 16            # batch of "sentences", context length (multiple of 16)
    VOCAB = 64
    D, H, LAYERS = 256, 4, 2   # width, heads (Dh=64 like CLIP)
    EMBED = 128

    key = jax.random.PRNGKey(0)
    pkey, tkey = jax.random.split(key)
    params = init_params(pkey, vocab=VOCAB, seq=S, width=D, heads=H,
                         layers=LAYERS, embed_dim=EMBED)

    tokens = jax.random.randint(tkey, (B, S), 1, VOCAB - 1, dtype=jnp.int32)
    tokens = tokens.at[:, -1].set(VOCAB - 1)   # EOT token = highest id

    out = encode_text(params, tokens)
    out = jax.block_until_ready(out)
    assert out.shape == (B, EMBED)
    assert bool(jnp.all(jnp.isfinite(out)))
    # embeddings are L2-normalized
    norms = jnp.linalg.norm(out.astype(jnp.float32), axis=-1)
    assert bool(jnp.all(jnp.abs(norms - 1.0) < 1e-2))
    print("KERNEL_OK")
</pallas_src>

<mosaic_0001>
module attributes {stable_mosaic.version = 11 : i64} {
  func.func @_ln_matmul_kernel(%arg0: i32, %arg1: i32, %arg2: memref<32x256xbf16, #tpu.memory_space<vmem>>, %arg3: memref<1x256xf32, #tpu.memory_space<vmem>>, %arg4: memref<1x256xf32, #tpu.memory_space<vmem>>, %arg5: memref<256x384xbf16, #tpu.memory_space<vmem>>, %arg6: memref<1x384xf32, #tpu.memory_space<vmem>>, %arg7: memref<32x384xbf16, #tpu.memory_space<vmem>>, %arg8: memref<32x256xbf16, #tpu.memory_space<vmem>>) attributes {dimension_semantics = [#tpu.dimension_semantics<parallel>, #tpu.dimension_semantics<arbitrary>], iteration_bounds = array<i64: 1, 2>, scalar_prefetch = 0 : i64, scratch_operands = 1 : i64, tpu.core_type = #tpu.core_type<tc>, window_params = [{transform_indices = @transform_0, window_bounds = array<i64: 32, 256>}, {pipeline_mode = #tpu.pipeline_mode<synchronous>, transform_indices = @transform_1, window_bounds = array<i64: 1, 256>}, {pipeline_mode = #tpu.pipeline_mode<synchronous>, transform_indices = @transform_2, window_bounds = array<i64: 1, 256>}, {transform_indices = @transform_3, window_bounds = array<i64: 256, 384>}, {transform_indices = @transform_4, window_bounds = array<i64: 1, 384>}, {transform_indices = @transform_5, window_bounds = array<i64: 32, 384>}]} {
    %c0_i32 = arith.constant 0 : i32
    %0 = arith.cmpi eq, %arg1, %c0_i32 : i32
    %1 = arith.extui %0 : i1 to i32
    %c0_i32_0 = arith.constant 0 : i32
    %2 = arith.cmpi ne, %1, %c0_i32_0 : i32
    scf.if %2 {
      %c0_8 = arith.constant 0 : index
      %c0_9 = arith.constant 0 : index
      %11 = vector.load %arg2[%c0_8, %c0_9] : memref<32x256xbf16, #tpu.memory_space<vmem>>, vector<32x256xbf16>
      %12 = arith.extf %11 : vector<32x256xbf16> to vector<32x256xf32>
      %cst_10 = arith.constant dense<0.000000e+00> : vector<32xf32>
      %13 = vector.multi_reduction <add>, %12, %cst_10 [1] : vector<32x256xf32> to vector<32xf32>
      %14 = vector.shape_cast %13 : vector<32xf32> to vector<32x1xf32>
      %cst_11 = arith.constant 2.560000e+02 : f32
      %15 = vector.broadcast %cst_11 : f32 to vector<32x1xf32>
      %16 = arith.divf %14, %15 : vector<32x1xf32>
      %17 = vector.broadcast %16 : vector<32x1xf32> to vector<32x256xf32>
      %18 = arith.subf %12, %17 : vector<32x256xf32>
      %19 = arith.mulf %18, %18 : vector<32x256xf32>
      %cst_12 = arith.constant dense<0.000000e+00> : vector<32xf32>
      %20 = vector.multi_reduction <add>, %19, %cst_12 [1] : vector<32x256xf32> to vector<32xf32>
      %21 = vector.shape_cast %20 : vector<32xf32> to vector<32x1xf32>
      %cst_13 = arith.constant 2.560000e+02 : f32
      %22 = vector.broadcast %cst_13 : f32 to vector<32x1xf32>
      %23 = arith.divf %21, %22 : vector<32x1xf32>
      %cst_14 = arith.constant 9.99999974E-6 : f32
      %24 = vector.broadcast %cst_14 : f32 to vector<32x1xf32>
      %25 = arith.addf %23, %24 : vector<32x1xf32>
      %26 = math.rsqrt %25 : vector<32x1xf32>
      %27 = vector.broadcast %26 : vector<32x1xf32> to vector<32x256xf32>
      %28 = arith.mulf %18, %27 : vector<32x256xf32>
      %c0_15 = arith.constant 0 : index
      %c0_16 = arith.constant 0 : index
      %29 = vector.load %arg3[%c0_15, %c0_16] : memref<1x256xf32, #tpu.memory_space<vmem>>, vector<1x256xf32>
      %30 = vector.broadcast %29 : vector<1x256xf32> to vector<32x256xf32>
      %31 = arith.mulf %28, %30 : vector<32x256xf32>
      %c0_17 = arith.constant 0 : index
      %c0_18 = arith.constant 0 : index
      %32 = vector.load %arg4[%c0_17, %c0_18] : memref<1x256xf32, #tpu.memory_space<vmem>>, vector<1x256xf32>
      %33 = vector.broadcast %32 : vector<1x256xf32> to vector<32x256xf32>
      %34 = arith.addf %31, %33 : vector<32x256xf32>
      %35 = arith.truncf %34 : vector<32x256xf32> to vector<32x256xbf16>
      %c0_19 = arith.constant 0 : index
      %c0_20 = arith.constant 0 : index
      %36 = vector.load %arg8[%c0_19, %c0_20] : memref<32x256xbf16, #tpu.memory_space<vmem>>, vector<32x256xbf16>
      tpu.vector_store %arg8[%c0_19, %c0_20], %35 {strides = array<i32>} : memref<32x256xbf16, #tpu.memory_space<vmem>>, vector<32x256xbf16>,
    } else {
    }
    %c0 = arith.constant 0 : index
    %c0_1 = arith.constant 0 : index
    %3 = vector.load %arg8[%c0, %c0_1] : memref<32x256xbf16, #tpu.memory_space<vmem>>, vector<32x256xbf16>
    %c0_2 = arith.constant 0 : index
    %c0_3 = arith.constant 0 : index
    %4 = vector.load %arg5[%c0_2, %c0_3] : memref<256x384xbf16, #tpu.memory_space<vmem>>, vector<256x384xbf16>
    %cst = arith.constant dense<0.000000e+00> : vector<32x384xf32>
    %5 = tpu.matmul %3, %4, %cst {dimension_numbers = #tpu.dot_dimension_numbers<[1], [0], [0], [1], [0, 0, 1, 1], [], []>} : vector<32x256xbf16>, vector<256x384xbf16>, vector<32x384xf32> -> vector<32x384xf32>
    %c0_4 = arith.constant 0 : index
    %c0_5 = arith.constant 0 : index
    %6 = vector.load %arg6[%c0_4, %c0_5] : memref<1x384xf32, #tpu.memory_space<vmem>>, vector<1x384xf32>
    %7 = vector.broadcast %6 : vector<1x384xf32> to vector<32x384xf32>
    %8 = arith.addf %5, %7 : vector<32x384xf32>
    %9 = arith.truncf %8 : vector<32x384xf32> to vector<32x384xbf16>
    %c0_6 = arith.constant 0 : index
    %c0_7 = arith.constant 0 : index
    %10 = vector.load %arg7[%c0_6, %c0_7] : memref<32x384xbf16, #tpu.memory_space<vmem>>, vector<32x384xbf16>
    tpu.vector_store %arg7[%c0_6, %c0_7], %9 {strides = array<i32>} : memref<32x384xbf16, #tpu.memory_space<vmem>>, vector<32x384xbf16>,
    return
  }
  func.func @transform_0(%arg0: i32, %arg1: i32) -> (i32, i32) {
    %c0_i32 = arith.constant 0 : i32
    %c0_i32_0 = arith.constant 0 : i32
    return %arg0, %c0_i32 : i32, i32
  }
  func.func @transform_1(%arg0: i32, %arg1: i32) -> (i32, i32) {
    %c0_i32 = arith.constant 0 : i32
    %c0_i32_0 = arith.constant 0 : i32
    %c0_i32_1 = arith.constant 0 : i32
    return %c0_i32, %c0_i32_0 : i32, i32
  }
  func.func @transform_2(%arg0: i32, %arg1: i32) -> (i32, i32) {
    %c0_i32 = arith.constant 0 : i32
    %c0_i32_0 = arith.constant 0 : i32
    %c0_i32_1 = arith.constant 0 : i32
    return %c0_i32, %c0_i32_0 : i32, i32
  }
  func.func @transform_3(%arg0: i32, %arg1: i32) -> (i32, i32) {
    %c0_i32 = arith.constant 0 : i32
    %c0_i32_0 = arith.constant 0 : i32
    return %c0_i32, %arg1 : i32, i32
  }
  func.func @transform_4(%arg0: i32, %arg1: i32) -> (i32, i32) {
    %c0_i32 = arith.constant 0 : i32
    %c0_i32_0 = arith.constant 0 : i32
    return %c0_i32, %arg1 : i32, i32
  }
  func.func @transform_5(%arg0: i32, %arg1: i32) -> (i32, i32) {
    %c0_i32 = arith.constant 0 : i32
    return %arg0, %arg1 : i32, i32
  }
}

</mosaic_0001>

<bundles_post_ra>
// kernel: tpu_custom_call.1
= control target key start
LH: loop header
LB: loop body
LE: loop exit
PB: predicated region body
PF: predicated region fallthrough
CT: control target
= control target key end

     0   :  { %s1961_s0 = inlined_call_operand.hbm [shape: bf16[32,256], index: 0, kind: input, shape index: {}]   ;;  %s1962_s1 = inlined_call_operand.hbm [shape: f32[1,256], index: 1, kind: input, shape index: {}]   ;;  %s1963_s2 = inlined_call_operand.hbm [shape: f32[1,256], index: 2, kind: input, shape index: {}]   ;;  %s1964_s3 = inlined_call_operand.hbm [shape: bf16[256,768], index: 3, kind: input, shape index: {}]   ;;  %s1965_s4 = inlined_call_operand.vmem [shape: f32[1,768], index: 4, kind: input, shape index: {}]   ;;  %s1966_s5 = inlined_call_operand.hbm [shape: bf16[32,768], index: 5, kind: output, shape index: {}]  }
   0x1   :  { %1973 = sst [smem:[#allocation16_spill]] %s1961_s0 }
   0x2   :  { %1974 = sst [smem:[#allocation17_spill]] %s1962_s1 }
   0x3   :  { %1975 = sst [smem:[#allocation18_spill]] %s1963_s2 }
   0x4   :  { %10 = vsyncpa [#allocation4], 0 }
   0x5   :  { %11 = vsyncpa [#allocation7], 0 }
   0x6   :  { %12 = vsyncpa [#allocation10], 0 }
   0x7   :  { %14 = vsyncpa [#allocation10 + $0x1], 0 }
   0x8   :  { %15 = vsyncpa [#allocation5], 0 }
   0x9   :  { %17 = vsyncpa [#allocation5 + $0x1], 0  ;;  %s1676_s18 = smov 0   ;;  %s1678_s19 = smov 0  }
   0xa   :  { %s1680_s20 = smov 0   ;;  %s1682_s21 = smov 0  }
   0xb   :  { %s1684_s22 = smov 0   ;;  %s1686_s23 = smov 0  }
   0xc LB: > { %s1133_s24 = sadd.s32 4294967295, %s1631_s23   ;;  %s1134_s25 = sadd.s32 4294967294, %s1631_s23   ;;  %s1631_s23 = sphi %s1686_s23, %s23_s23   ;;  %s1627_s22 = sphi %s1684_s22, %s1998_s22   ;;  %s1623_s21 = sphi %s1682_s21, %s1997_s21   ;;  %s1619_s20 = sphi %s1680_s20, %s1996_s20   ;;  %s1615_s19 = sphi %s1678_s19, %s1995_s19   ;;  %s1611_s18 = sphi %s1676_s18, %s1994_s18  }
   0xd   : > { %s110_s26 = sadd.s32 1, %s1619_s20  ;;  %p117_p0 = scmp.ne.s32.totalorder %s1619_s20, %s1615_s19 }
   0xe   : > { %p118_p1 = scmp.eq.s32.totalorder %s1631_s23, 0  ;;  %p123_p2 = scmp.ne.s32.totalorder %s1615_s19, %s1611_s18 }
   0xf   : > { %p1714_p3 = scmp.eq.s32.totalorder %s1133_s24, 0  ;;  %p175_p4 = scmp.eq.s32.totalorder %s1133_s24, 1 }
  0x10   : > { %p1718_p5 = por %p118_p1, %p117_p0  ;;  %p181_p6 = scmp.eq.s32.totalorder %s1134_s25, 1 }
  0x11   : > { %s1976_s27 = scalar_select %p1714_p3, 1, 0 }
  0x12   : > { %p1724_p7 = por %p1714_p3, %p123_p2  ;;  %p1728_p8 = por %p175_p4, %p117_p0 }
  0x13   : > { %p1732_p9 = por %p181_p6, %p123_p2  ;;  %p1135_p10 = scmp.ge.s32.totalorder %s1631_s23, 1 }
  0x14   : > { %s1978_s29 = scalar_select %p1724_p7, 1, 0 }
  0x15   : > { %s1979_s30 = scalar_select %p1728_p8, 1, 0 }
  0x16   : > { %s1980_s6 = scalar_select %p1732_p9, 1, 0 }
  0x17   : > { %p188_p11 = scmp.lt.s32.totalorder %s1631_s23, 3  ;;  %s1633_s8 = smov [#allocation6]  }
  0x18   : > { %s218_s9 = sshll.u32 %s1633_s8, 4  ;;  %p1295_p1 = scmp.lt.s32.totalorder %s1631_s23, 2  ;;  %s219_s9 = int_to_ptr.vmem [resolvable:$true] %s218_s9 }
  0x19   : > { %p1739_p13 = pnand %p1135_p10, %p188_p11  ;;  %s1634_s12 = smov [#allocation3]  }
  0x1a   : > { %p1748_p4 = pnand %p1295_p1, %p1718_p5  ;;  %s204_s13 = sshll.u32 %s1634_s12, 4  ;;  %s205_s13 = int_to_ptr.vmem [resolvable:$true] %s204_s13 }
  0x1b   : > { %s1981_s7 = scalar_select %p1739_p13, 1, 0 }
  0x1c   : > { %p1274_p0 = pneg %p1739_p13  ;;  %s1448_s14 = scalar_lea.vmem %s219_s9, 32 }
  0x1d   : > { %s1982_s10 = scalar_select %p1748_p4, 1, 0 }
  0x1e   : > { %p1754_p2 = pnand %p1274_p0, %p1714_p3  ;;  %p1449_p10 = scmp.ne.s32.totalorder %s219_s9, %s1448_s14 }
  0x1f   : > { %p1456_p1 = scmp.lt.s32.totalorder %s219_s9, %s219_s9  ;;  %p1457_p12 = scmp.lt.s32.totalorder %s1448_s14, %s1448_s14 }
  0x20   : > { %p1439_p6 = pneg %p1754_p2 }
  0x21   : > { %p1458_p9 = por %p1457_p12, %p1456_p1 }
  0x22   : > { %p1451_p5 = pnand %p1449_p10, %p1439_p6 }
  0x24   : > { %p1452_p11 = pneg %p1451_p5 }
  0x26   : > { %p1459_p0 = pnand %p1458_p9, %p1452_p11 }
  0x28   : > { %1462 = shalt.err (!%p1459_p0)
}
  0x29   : > { %s1984_s1 = sld [smem:[#allocation17_spill]]  ;;  %s1474_s17 = scalar_lea.vmem %s205_s13, 512 }
  0x2a   : > { %p1475_p8 = scmp.ne.s32.totalorder %s205_s13, %s1474_s17  ;;  %p1482_p10 = scmp.lt.s32.totalorder %s205_s13, %s205_s13 }
  0x2b   : > { %p1483_p5 = scmp.lt.s32.totalorder %s1474_s17, %s1474_s17 }
  0x2c   : > { %p1477_p7 = pnand %p1475_p8, %p1439_p6 }
  0x2d   : > { %p1484_p13 = por %p1483_p5, %p1482_p10 }
  0x2e   : > { %p1478_p3 = pneg %p1477_p7 }
  0x2f   : > { %1280 = dma.hbm_to_vmem [thread:$0]  (!%p1754_p2), %s1984_s1, 32, %s219_s9, [#allocation7]  }
  0x30   : > { %p1485_p4 = pnand %p1484_p13, %p1478_p3 }
  0x32   : > { %1488 = shalt.err (!%p1485_p4)
}
  0x33   : > { %s1635_s24 = smov 128   ;;  %s1636_s25 = smov 8  }
  0x34   : > { %s1985_s0 = sld [smem:[#allocation16_spill]]  ;;  %s1637_s9 = smov [#allocation8]  }
  0x35   : > { %s229_s12 = sshll.u32 %s1637_s9, 4  ;;  %s32_s14 = sadd.s32 1, %s1627_s22  ;;  %s230_s12 = int_to_ptr.vmem [resolvable:$true] %s229_s12 }
  0x36   : > { %s1500_s15 = scalar_lea.vmem %s230_s12, 32  ;;  %p1508_p9 = scmp.lt.s32.totalorder %s230_s12, %s230_s12 }
  0x37   : > { %p1501_p7 = scmp.ne.s32.totalorder %s230_s12, %s1500_s15  ;;  %p1509_p12 = scmp.lt.s32.totalorder %s1500_s15, %s1500_s15 }
  0x39   : > { %p1503_p3 = pnand %p1501_p7, %p1439_p6  ;;  %p1510_p13 = por %p1509_p12, %p1508_p9 }
  0x3a   : > { %1277 = dma.hbm_to_vmem [thread:$0]  (!%p1754_p2), %s1985_s0, 512, %s205_s13, [#allocation4], %s1635_s24, %s1635_s24, %s1636_s25  }
  0x3b   : > { %p1504_p8 = pneg %p1503_p3 }
  0x3d   : > { %p1511_p4 = pnand %p1510_p13, %p1504_p8 }
  0x3f   : > { %1514 = shalt.err (!%p1511_p4)
}
  0x40   : > { %s1986_s2 = sld [smem:[#allocation18_spill]]  ;;  %p33_p11 = scmp.ge.s32.totalorder %s32_s14, 2 }
  0x41   : > { %s240_s13 = sand.u32 1, %s1619_s20   ;;  %s1213_s25 = smul.u32 192, %s1627_s22 }
  0x42   : > { %s1255_s24 = smul.u32 384, %s240_s13  ;;  %s2000_s14 = smov (%p33_p11, %s32_s14), 0 }
  0x43   : > { %s107_s28 = ssub.s32 %s1627_s22, %s2000_s14  ;;  %s250_s16 = scalar_lea.hbm %s1964_s3, %s1213_s25 }
  0x44   : > { %s244_s8 = scalar_lea.vmem [#allocation9], %s1255_s24  ;;  %p108_p6 = scmp.eq.s32.totalorder %s107_s28, 0 }
  0x45   : > { %s251_s11 = sshll.u32 %s244_s8, 4  ;;  %s1638_s1 = smov [#allocation9]   ;;  %s252_s11 = int_to_ptr.vmem [resolvable:$true] %s251_s11 }
  0x46   : > { %1283 = dma.hbm_to_vmem [thread:$0]  (!%p1754_p2), %s1986_s2, 32, %s230_s12, [#allocation7]  }
  0x47   : > { %s1797_s17 = scalar_select %p108_p6, %s1619_s20, %s110_s26  }
  0x48   : > { %s241_s12 = scalar_lea.sflag [#allocation10], %s240_s13  ;;  %p1987_p2 = scmp.ne.s32.totalorder %s1982_s10, 0 }
  0x49   : > { %s1528_s0 = scalar_lea.vmem %s252_s11, 6144  ;;  %s1533_s2 = sshll.u32 %s1638_s1, 4  ;;  %s1534_s2 = int_to_ptr.vmem [resolvable:$false] %s1533_s2 }
  0x4a   : > { %p1517_p1 = pneg %p1987_p2  ;;  %p1529_p0 = scmp.ne.s32.totalorder %s252_s11, %s1528_s0 }
  0x4b   : > { %s1535_s24 = scalar_lea.vmem %s1534_s2, 12288  ;;  %p1536_p7 = scmp.lt.s32.totalorder %s252_s11, %s1534_s2 }
  0x4c   : > { %p1531_p10 = pnand %p1529_p0, %p1517_p1  ;;  %p1537_p3 = scmp.lt.s32.totalorder %s1535_s24, %s1528_s0 }
  0x4e   : > { %p1532_p5 = pneg %p1531_p10  ;;  %p1538_p8 = por %p1537_p3, %p1536_p7 }
  0x50   : > { %p1539_p9 = pnand %p1538_p8, %p1532_p5 }
  0x52   : > { %1542 = shalt.err (!%p1539_p9)
}
  0x53   : > { %s1639_s25 = smov 384   ;;  %s1640_s26 = smov 192  }
  0x54   : > { %s1641_s28 = smov 12   ;;  %p1988_p12 = scmp.ne.s32.totalorder %s1981_s7, 0 }
  0x55   : > { %1287 = dma.hbm_to_vmem [thread:$0]  (!%p1987_p2), %s250_s16, 6144, %s252_s11, %s241_s12, %s1639_s25, %s1640_s26, %s1641_s28  }
  0x56   : > { %271 = sbr.rel (%p1988_p12) target bundleno = 721 (0x2d1), region = 40  ;;  %p1989_p13 = scmp.ne.s32.totalorder (!%p1988_p12), %s1976_s27, 0 }
  0x5b   : > { %1594 = dma.done.wait (%p1989_p13), [#allocation4], 512  }
  0x5c   : > { %1596 = vsyncadd (%p1989_p13), [#allocation4], 4294966784 }
  0x5d   : > { %1598 = dma.done.wait (%p1989_p13), [#allocation7], 64  }
  0x5e   : > { %1600 = vsyncadd (%p1989_p13), [#allocation7], 4294967232  ;;  %s1814_s0 = sand.u32 1, %s1615_s19   ;;  %p1990_p4 = scmp.ne.s32.totalorder %s1978_s29, 0 }
  0x5f   : > { %s1256_s1 = smul.u32 384, %s1814_s0  ;;  %s286_s2 = scalar_lea.sflag [#allocation10], %s1814_s0 }
  0x61   : > { %s1818_s7 = scalar_lea.vmem [#allocation9], %s1256_s1 }
  0x62   : > { %1602 = dma.done.wait (%p1990_p4), %s286_s2, 6144  }
  0x63   : > { %1604 = vsyncadd (%p1990_p4), %s286_s2, 4294961152  ;;  %s1257_s10 = smul.u32 48, %s1814_s0  ;;  %p1145_p6 = scmp.ne.s32.totalorder %s1623_s21, 0 }
  0x64   : > { %s322_s27 = smul.u32 3, %s1623_s21 }
  0x65   : > { %s1832_s9 = scalar_lea.vmem [#allocation11], %s1257_s10  ;;  %333 = sbr.rel (%p1145_p6) target bundleno = 430 (0x1ae), region = 60 }
  0x66   : > { %p323_p11 = scmp.lt.s32.totalorder %s322_s27, 5 }
  0x68   : > { %s2002_s27 = smov (!%p323_p11, %s322_s27), 5 }
  0x69   : > { %s325_s11 = scalar_lea.vmem %s1965_s4, %s2002_s27 }
  0x6a   : > { %v334_v0 = vld [vmem:[#allocation3] sm:$0xff]  ;;  %v336_v1 = vld [vmem:[#allocation3 + $0x10] sm:$0xff]  ;;  %v335_v2 = vld [vmem:[#allocation3 + $0x8] sm:$0xff]  ;;  %v413_v50 = vlaneseq }
  0x6b   : > { %v338_v3 = vunpack.c.l.bf16 %v334_v0  ;;  %v339_v4 = vunpack.c.h.bf16 %v334_v0  ;;  %v342_v5 = vunpack.c.l.bf16 %v336_v1  ;;  %v343_v6 = vunpack.c.h.bf16 %v336_v1  ;;  %v337_v7 = vld [vmem:[#allocation3 + $0x18] sm:$0xff]  ;;  %v411_v60 = vld [vmem:[#allocation6] sm:$0x3]  ;;  %v431_v61 = vld [vmem:[#allocation8] sm:$0x3] }
  0x6c   : > { %v340_v8 = vunpack.c.l.bf16 %v335_v2  ;;  %v341_v9 = vunpack.c.h.bf16 %v335_v2  ;;  %v344_v10 = vunpack.c.l.bf16 %v337_v7  ;;  %v345_v11 = vunpack.c.h.bf16 %v337_v7 }
  0x6d   : > { %v346_v12 = vadd.f32 %v339_v4, %v338_v3  ;;  %v352_v13 = vadd.f32 %v343_v6, %v342_v5  ;;  %v414_v56 = vshrl.u32 %v413_v50, 7 }
  0x6e   : > { %v349_v14 = vadd.f32 %v341_v9, %v340_v8  ;;  %v355_v15 = vadd.f32 %v345_v11, %v344_v10 }
  0x6f   : > { %347 = vadd.xlane.f32.xlu0 %v346_v12  ;;  %353 = vadd.xlane.f32.xlu1 %v352_v13  ;;  %v415_v58 = vsub.s32 0, %v414_v56  ;;  %v419_v59 = vsub.s32 1, %v414_v56 }
  0x71   : > { %v416_v62 = vrot.slane %v411_v60, %v415_v58  ;;  %v420_v63 = vrot.slane %v411_v60, %v419_v59  ;;  %v436_v1 = vrot.slane %v431_v61, %v415_v58  ;;  %v440_v2 = vrot.slane %v431_v61, %v419_v59 }
  0x73   : > { %350 = vadd.xlane.f32.xlu0 %v349_v14  ;;  %356 = vadd.xlane.f32.xlu1 %v355_v15 }
  0xf8   : > { %v348_v16 = vpop.xlane.xlu0 %347  ;;  %v354_v17 = vpop.xlane.xlu1 %353 }
  0xf9   : > { %v359_v18 = vmul.f32 0.00390625, %v348_v16  ;;  %v361_v19 = vmul.f32 0.00390625, %v354_v17 }
  0xfb   : > { %v363_v20 = vsub.f32 %v338_v3, %v359_v18  ;;  %v364_v21 = vsub.f32 %v339_v4, %v359_v18  ;;  %v1835_v22 = vsub.f32 %v342_v5, %v361_v19  ;;  %v1837_v23 = vsub.f32 %v343_v6, %v361_v19 }
  0xfc   : > { %v351_v24 = vpop.xlane.xlu0 %350  ;;  %v357_v25 = vpop.xlane.xlu1 %356 }
  0xfd   : > { %v360_v26 = vmul.f32 0.00390625, %v351_v24  ;;  %v362_v27 = vmul.f32 0.00390625, %v357_v25  ;;  %v371_v28 = vmul.f32 %v363_v20, %v363_v20  ;;  %v372_v29 = vmul.f32 %v364_v21, %v364_v21 }
  0xfe   : > { %v375_v30 = vmul.f32 %v1835_v22, %v1835_v22  ;;  %v376_v31 = vmul.f32 %v1837_v23, %v1837_v23 }
  0xff   : > { %v365_v32 = vsub.f32 %v340_v8, %v360_v26  ;;  %v366_v33 = vsub.f32 %v341_v9, %v360_v26  ;;  %v369_v34 = vsub.f32 %v344_v10, %v362_v27  ;;  %v370_v35 = vsub.f32 %v345_v11, %v362_v27 }
 0x100   : > { %v379_v36 = vadd.f32 %v372_v29, %v371_v28  ;;  %v385_v41 = vadd.f32 %v376_v31, %v375_v30 }
 0x101   : > { %v373_v37 = vmul.f32 %v365_v32, %v365_v32  ;;  %v374_v38 = vmul.f32 %v366_v33, %v366_v33  ;;  %v377_v39 = vmul.f32 %v369_v34, %v369_v34  ;;  %v378_v40 = vmul.f32 %v370_v35, %v370_v35 }
 0x102   : > { %380 = vadd.xlane.f32.xlu0 %v379_v36 }
 0x103   : > { %v382_v42 = vadd.f32 %v374_v38, %v373_v37  ;;  %v388_v43 = vadd.f32 %v378_v40, %v377_v39 }
 0x105   : > { %383 = vadd.xlane.f32.xlu1 %v382_v42 }
 0x106   : > { %386 = vadd.xlane.f32.xlu0 %v385_v41 }
 0x109   : > { %389 = vadd.xlane.f32.xlu1 %v388_v43 }
 0x18b   : > { %v381_v44 = vpop.xlane.xlu0 %380 }
 0x18c   : > { %v391_v45 = vmul.f32 0.00390625, %v381_v44 }
 0x18e   : > { %v395_v46 = vadd.f32 1e-05, %v391_v45  ;;  %v384_v47 = vpop.xlane.xlu1 %383 }
 0x18f   : > { %v392_v48 = vmul.f32 0.00390625, %v384_v47  ;;  %v387_v49 = vpop.xlane.xlu0 %386 }
 0x190   : > { %1359 = vrsqrt.f32 %v395_v46  ;;  %v393_v51 = vmul.f32 0.00390625, %v387_v49 }
 0x191   : > { %v396_v52 = vadd.f32 1e-05, %v392_v48 }
 0x192   : > { %v397_v53 = vadd.f32 1e-05, %v393_v51  ;;  %v390_v54 = vpop.xlane.xlu1 %389 }
 0x193   : > { %1361 = vrsqrt.f32 %v396_v52  ;;  %v394_v55 = vmul.f32 0.00390625, %v390_v54 }
 0x194   : > { %1363 = vrsqrt.f32 %v397_v53 }
 0x195   : > { %v398_v57 = vadd.f32 1e-05, %v394_v55 }
 0x197   : > { %1365 = vrsqrt.f32 %v398_v57 }
 0x19d   : > { %v1360_v0 = vpop.eup %1359 }
 0x19e   : > { %v403_v3 = vmul.f32 %v1360_v0, %v363_v20  ;;  %v404_v4 = vmul.f32 %v1360_v0, %v364_v21 }
 0x1a0   : > { %v1362_v5 = vpop.eup %1361  ;;  %v423_v6 = vmul.f32 %v416_v62, %v403_v3  ;;  %v424_v7 = vmul.f32 %v420_v63, %v404_v4 }
 0x1a1   : > { %v1364_v8 = vpop.eup %1363  ;;  %v405_v9 = vmul.f32 %v1362_v5, %v365_v32  ;;  %v406_v10 = vmul.f32 %v1362_v5, %v366_v33 }
 0x1a2   : > { %v443_v11 = vadd.f32 %v436_v1, %v423_v6  ;;  %v444_v12 = vadd.f32 %v440_v2, %v424_v7  ;;  %v407_v13 = vmul.f32 %v1364_v8, %v1835_v22  ;;  %v408_v14 = vmul.f32 %v1364_v8, %v1837_v23 }
 0x1a3   : > { %v425_v15 = vmul.f32 %v416_v62, %v405_v9  ;;  %v426_v16 = vmul.f32 %v420_v63, %v406_v10 }
 0x1a4   : > { %v1366_v17 = vpop.eup %1365  ;;  %v1214_v18 = vpack.c.bf16 %v444_v12, %v443_v11  ;;  %v427_v19 = vmul.f32 %v416_v62, %v407_v13  ;;  %v428_v24 = vmul.f32 %v420_v63, %v408_v14 }
 0x1a5   : > { %v445_v20 = vadd.f32 %v436_v1, %v425_v15  ;;  %v446_v21 = vadd.f32 %v440_v2, %v426_v16  ;;  %v409_v25 = vmul.f32 %v1366_v17, %v369_v34  ;;  %v410_v26 = vmul.f32 %v1366_v17, %v370_v35 }
 0x1a6   : > { %475 = vst [vmem:[#allocation2 + $0x10] sm:$0xff] %v1214_v18  ;;  %v447_v27 = vadd.f32 %v436_v1, %v427_v19  ;;  %v448_v28 = vadd.f32 %v440_v2, %v428_v24 }
 0x1a7   : > { %v1215_v29 = vpack.c.bf16 %v446_v21, %v445_v20  ;;  %v429_v30 = vmul.f32 %v416_v62, %v409_v25  ;;  %v430_v31 = vmul.f32 %v420_v63, %v410_v26 }
 0x1a8   : > { %v1216_v32 = vpack.c.bf16 %v448_v28, %v447_v27 }
 0x1a9   : > { %476 = vst [vmem:[#allocation2] sm:$0xff] %v1215_v29  ;;  %v449_v22 = vadd.f32 %v436_v1, %v429_v30  ;;  %v450_v23 = vadd.f32 %v440_v2, %v430_v31 }
 0x1aa   : > { %477 = vst [vmem:[#allocation2 + $0x18] sm:$0xff] %v1216_v32 }
 0x1ab   : > { %v1217_v33 = vpack.c.bf16 %v450_v23, %v449_v22 }
 0x1ad   : > { %478 = vst [vmem:[#allocation2 + $0x8] sm:$0xff] %v1217_v33 }
 0x1ae PF: > { %v1367_v34 = vld [vmem:[%s1818_s7 + $0xac] ss:$12 sps:$4 sm:$0xff]   ;;  %v1369_v35 = vld [vmem:[%s1818_s7 + $0xa8] ss:$12 sps:$4 sm:$0xff]   ;;  %v1372_v37 = vld [vmem:[%s1818_s7 + $0x90] ss:$12 sps:$4 sm:$0xff]   ;;  %v549_v21 = vlaneseq }
 0x1af   : > { %840 = vmatprep.subr.bf16.mxu0 %v1367_v34  ;;  %v1370_v36 = vld [vmem:[%s1818_s7 + $0x94] ss:$12 sps:$4 sm:$0xff]   ;;  %v1373_v38 = vld [vmem:[%s1818_s7 + $0x7c] ss:$12 sps:$4 sm:$0xff]   ;;  %v1375_v39 = vld [vmem:[%s1818_s7 + $0x78] ss:$12 sps:$4 sm:$0xff]  }
 0x1b0   : > { %841 = vmatpush1.bf16.msra.mxu0 %v1369_v35  ;;  %v1376_v40 = vld [vmem:[%s1818_s7 + $0x64] ss:$12 sps:$4 sm:$0xff]   ;;  %v1378_v42 = vld [vmem:[%s1818_s7 + $0x60] ss:$12 sps:$4 sm:$0xff]   ;;  %v1381_v47 = vld [vmem:[%s1818_s7 + $0x48] ss:$12 sps:$4 sm:$0xff]  }
 0x1b1   : > { %842 = vmatprep.subr.bf16.mxu0 %v1370_v36  ;;  %v1387_v41 = vld [vmem:[%s1818_s7 + $0x170] ss:$12 sps:$4 sm:$0xff]   ;;  %v1379_v44 = vld [vmem:[%s1818_s7 + $0x4c] ss:$12 sps:$4 sm:$0xff]   ;;  %v1382_v48 = vld [vmem:[%s1818_s7 + $0x34] ss:$12 sps:$4 sm:$0xff]  }
 0x1b2   : > { %1227 = vmatprep.subr.bf16.mxu1 %v1387_v41  ;;  %v1389_v43 = vld [vmem:[%s1818_s7 + $0xb0] ss:$12 sps:$4 sm:$0xff]   ;;  %v1392_v45 = vld [vmem:[%s1818_s7 + $0x158] ss:$12 sps:$4 sm:$0xff]   ;;  %v1397_v49 = vld [vmem:[%s1818_s7 + $0x140] ss:$12 sps:$4 sm:$0xff]  }
 0x1b3   : > { %1228 = vmatpush3.bf16.msra.mxu1 %v1389_v43  ;;  %v1394_v46 = vld [vmem:[%s1818_s7 + $0x98] ss:$12 sps:$4 sm:$0xff]   ;;  %v1399_v50 = vld [vmem:[%s1818_s7 + $0x80] ss:$12 sps:$4 sm:$0xff]   ;;  %v1384_v51 = vld [vmem:[%s1818_s7 + $0x30] ss:$12 sps:$4 sm:$0xff]  }
 0x1b4   : > { %843 = vmatpush1.bf16.msra.mxu0 %v1372_v37  ;;  %1229 = vmatprep.subr.bf16.mxu1 %v1392_v45  ;;  %v1402_v52 = vld [vmem:[%s1818_s7 + $0x128] ss:$12 sps:$4 sm:$0xff]   ;;  %v1388_v55 = vld [vmem:[%s1818_s7 + $0x18] ss:$12 sps:$4 sm:$0xff]   ;;  %v1407_v56 = vld [vmem:[%s1818_s7 + $0x110] ss:$12 sps:$4 sm:$0xff]  }
 0x1b5   : > { %844 = vmatprep.subr.bf16.mxu0 %v1373_v38  ;;  %v1385_v53 = vld [vmem:[%s1818_s7 + $0x1c] ss:$12 sps:$4 sm:$0xff]   ;;  %v1390_v57 = vld [vmem:[%s1818_s7 + $0x4] ss:$12 sps:$4 sm:$0xff]   ;;  %v1393_v60 = vld [vmem:[%s1818_s7] ss:$12 sps:$4 sm:$0xff]  }
 0x1b6   : > { %v1404_v54 = vld [vmem:[%s1818_s7 + $0x68] ss:$12 sps:$4 sm:$0xff]   ;;  %v1409_v58 = vld [vmem:[%s1818_s7 + $0x50] ss:$12 sps:$4 sm:$0xff]   ;;  %v1412_v59 = vld [vmem:[%s1818_s7 + $0xf8] ss:$12 sps:$4 sm:$0xff]  }
 0x1b7   : > { %1230 = vmatpush3.bf16.msra.mxu1 %v1394_v46  ;;  %v1395_v61 = vld [vmem:[%s1818_s7 + $0x16c] ss:$12 sps:$4 sm:$0xff]   ;;  %v1398_v0 = vld [vmem:[%s1818_s7 + $0x168] ss:$12 sps:$4 sm:$0xff]   ;;  %v1403_v4 = vld [vmem:[%s1818_s7 + $0x150] ss:$12 sps:$4 sm:$0xff]  }
 0x1b8   : > { %845 = vmatpush1.bf16.msra.mxu0 %v1375_v39  ;;  %1231 = vmatprep.subr.bf16.mxu1 %v1397_v49  ;;  %v1414_v62 = vld [vmem:[%s1818_s7 + $0x38] ss:$12 sps:$4 sm:$0xff]   ;;  %v1417_v63 = vld [vmem:[%s1818_s7 + $0xe0] ss:$12 sps:$4 sm:$0xff]   ;;  %v1422_v3 = vld [vmem:[%s1818_s7 + $0xc8] ss:$12 sps:$4 sm:$0xff]  }
 0x1b9   : > { %846 = vmatprep.subr.bf16.mxu0 %v1376_v40  ;;  %v1400_v1 = vld [vmem:[%s1818_s7 + $0x154] ss:$12 sps:$4 sm:$0xff]   ;;  %v1405_v6 = vld [vmem:[%s1818_s7 + $0x13c] ss:$12 sps:$4 sm:$0xff]   ;;  %v1408_v8 = vld [vmem:[%s1818_s7 + $0x138] ss:$12 sps:$4 sm:$0xff]  }
 0x1ba   : > { %v1419_v2 = vld [vmem:[%s1818_s7 + $0x20] ss:$12 sps:$4 sm:$0xff]   ;;  %v1424_v7 = vld [vmem:[%s1818_s7 + $0x8] ss:$12 sps:$4 sm:$0xff]   ;;  %v1410_v9 = vld [vmem:[%s1818_s7 + $0x124] ss:$12 sps:$4 sm:$0xff]  }
 0x1bb   : > { %1232 = vmatpush3.bf16.msra.mxu1 %v1399_v50  ;;  %v1427_v5 = vld [vmem:[#allocation2 + $0x14] ss:$-16 sps:$4 sm:$0xff]   ;;  %v1425_v10 = vld [vmem:[#allocation2 + $0x10] ss:$-16 sps:$4 sm:$0xff]   ;;  %v1434_v11 = vld [vmem:[#allocation2 + $0x1c] ss:$-16 sps:$4 sm:$0xff]  }
 0x1bc   : > { %847 = vmatpush1.bf16.msra.mxu0 %v1378_v42  ;;  %1233 = vmatprep.subr.bf16.mxu1 %v1402_v52  ;;  %v1413_v12 = vld [vmem:[%s1818_s7 + $0x120] ss:$12 sps:$4 sm:$0xff]   ;;  %v1418_v14 = vld [vmem:[%s1818_s7 + $0x108] ss:$12 sps:$4 sm:$0xff]   ;;  %v1423_v17 = vld [vmem:[%s1818_s7 + $0xf0] ss:$12 sps:$4 sm:$0xff]  }
 0x1bd   : > { %848 = vmatprep.subr.bf16.mxu0 %v1379_v44  ;;  %925 = vmatprep.mubr.bf16.mxu1 %v1427_v5  ;;  %v1415_v13 = vld [vmem:[%s1818_s7 + $0x10c] ss:$12 sps:$4 sm:$0xff]   ;;  %v1420_v15 = vld [vmem:[%s1818_s7 + $0xf4] ss:$12 sps:$4 sm:$0xff]   ;;  %v1428_v18 = vld [vmem:[%s1818_s7 + $0xdc] ss:$12 sps:$4 sm:$0xff]  }
 0x1be   : > { %872 = vmatprep.mubr.bf16.mxu0 %v1427_v5  ;;  %v1436_v16 = vld [vmem:[#allocation2 + $0x18] ss:$-16 sps:$4 sm:$0xff]   ;;  %v1433_v20 = vld [vmem:[%s1818_s7 + $0xc0] ss:$12 sps:$4 sm:$0xff]   ;;  %v550_v25 = vshrl.u32 %v549_v21, 7  ;;  %s1226_s16 = smul.u32 192, %s1623_s21 }
 0x1bf   : > { %1234 = vmatpush3.bf16.msra.mxu1 %v1404_v54  ;;  %v1430_v19 = vld [vmem:[%s1818_s7 + $0xd8] ss:$12 sps:$4 sm:$0xff]   ;;  %v547_v27 = vld [vmem:[%s325_s11] sm:$0x7]  ;;  %s1007_s12 = sshll.u32 %s1832_s9, 4  ;;  %s991_s21 = scalar_lea.sflag [#allocation5], %s1814_s0  ;;  %s1912_s12 = int_to_ptr.vmem [resolvable:$true] %s1007_s12 }
 0x1c0   : > { %849 = vmatpush1.bf16.msra.mxu0 %v1381_v47  ;;  %1235 = vmatprep.subr.bf16.mxu1 %v1407_v56  ;;  %v1431_v24 = vld [vmem:[%s1818_s7 + $0xc4] ss:$12 sps:$4 sm:$0xff]   ;;  %v559_v26 = vsub.s32 2, %v550_v25  ;;  %v551_v45 = vsub.s32 0, %v550_v25  ;;  %v555_v46 = vsub.s32 1, %v550_v25  ;;  %s1910_s26 = scalar_lea.hbm %s1966_s5, %s1226_s16  ;;  %s1543_s28 = scalar_lea.vmem %s1912_s12, 768 }
 0x1c1   : > { %850 = vmatprep.subr.bf16.mxu0 %v1382_v48  ;;  %p1544_p2 = scmp.ne.s32.totalorder %s1912_s12, %s1543_s28  ;;  %p1991_p1 = scmp.ne.s32.totalorder %s1979_s30, 0 }
 0x1c2   : > { %v560_v29 = vrot.slane %v547_v27, %v559_v26  ;;  %v552_v49 = vrot.slane %v547_v27, %v551_v45  ;;  %v556_v50 = vrot.slane %v547_v27, %v555_v46  ;;  %s1642_s1 = smov [#allocation11]  }
 0x1c3   : > { %1236 = vmatpush3.bf16.msra.mxu1 %v1409_v58  ;;  %p1545_p0 = pnand %p1544_p2, %p1991_p1  ;;  %s1547_s2 = sshll.u32 %s1642_s1, 4  ;;  %s1548_s2 = int_to_ptr.vmem [resolvable:$false] %s1547_s2 }
 0x1c4   : > { %851 = vmatpush1.bf16.msra.mxu0 %v1384_v51  ;;  %1237 = vmatprep.subr.bf16.mxu1 %v1412_v59  ;;  %s1549_s7 = scalar_lea.vmem %s1548_s2, 1536  ;;  %p1550_p5 = scmp.lt.s32.totalorder %s1912_s12, %s1548_s2 }
 0x1c5   : > { %852 = vmatprep.subr.bf16.mxu0 %v1385_v53  ;;  %p1546_p10 = pneg %p1545_p0  ;;  %p1551_p7 = scmp.lt.s32.totalorder %s1549_s7, %s1543_s28 }
 0x1c7   : > { %1238 = vmatpush3.bf16.msra.mxu1 %v1414_v62  ;;  %p1552_p3 = por %p1551_p7, %p1550_p5 }
 0x1c8   : > { %853 = vmatpush1.bf16.msra.mxu0 %v1388_v55  ;;  %1239 = vmatprep.subr.bf16.mxu1 %v1417_v63 }
 0x1c9   : > { %854 = vmatprep.subr.bf16.mxu0 %v1390_v57  ;;  %p1553_p8 = pnand %p1552_p3, %p1546_p10 }
 0x1cb   : > { %1240 = vmatpush3.bf16.msra.mxu1 %v1419_v2 }
 0x1cc   : > { %855 = vmatpush1.bf16.msra.mxu0 %v1393_v60  ;;  %1241 = vmatprep.subr.bf16.mxu1 %v1422_v3 }
 0x1cd   : > { %856 = vmatprep.subr.bf16.mxu0 %v1395_v61 }
 0x1cf   : > { %1242 = vmatpush3.bf16.msra.mxu1 %v1424_v7 }
 0x1d0   : > { %857 = vmatpush2.bf16.msra.mxu0 %v1398_v0 }
 0x1d1   : > { %858 = vmatprep.subr.bf16.mxu0 %v1400_v1 }
 0x1d2   : > { %926 = vmatmul.mubr.bf16.vlgmr.msra.gmra.mxu1 %v1425_v10 }
 0x1d3   : > { %933 = vmatprep.mubr.bf16.mxu1 %v1434_v11 }
 0x1d4   : > { %859 = vmatpush2.bf16.msra.mxu0 %v1403_v4 }
 0x1d5   : > { %860 = vmatprep.subr.bf16.mxu0 %v1405_v6 }
 0x1d8   : > { %861 = vmatpush2.bf16.msra.mxu0 %v1408_v8 }
 0x1d9   : > { %862 = vmatprep.subr.bf16.mxu0 %v1410_v9 }
 0x1da   : > { %934 = vmatmul.mubr.bf16.gmra.mxu1 %v1436_v16 }
 0x1dc   : > { %863 = vmatpush2.bf16.msra.mxu0 %v1413_v12 }
 0x1dd   : > { %864 = vmatprep.subr.bf16.mxu0 %v1415_v13 }
 0x1e0   : > { %865 = vmatpush2.bf16.msra.mxu0 %v1418_v14 }
 0x1e1   : > { %866 = vmatprep.subr.bf16.mxu0 %v1420_v15 }
 0x1e4   : > { %867 = vmatpush2.bf16.msra.mxu0 %v1423_v17 }
 0x1e5   : > { %868 = vmatprep.subr.bf16.mxu0 %v1428_v18 }
 0x1e8   : > { %869 = vmatpush2.bf16.msra.mxu0 %v1430_v19 }
 0x1e9   : > { %870 = vmatprep.subr.bf16.mxu0 %v1431_v24 }
 0x1ec   : > { %871 = vmatpush2.bf16.msra.mxu0 %v1433_v20 }
 0x1ef   : > { %873 = vmatmul.mubr.bf16.vlgmr.msra.gmra.mxu0 %v1425_v10 }
 0x1f0   : > { %882 = vmatprep.mubr.bf16.mxu0 %v1434_v11 }
 0x1f7   : > { %883 = vmatmul.mubr.bf16.gmra.mxu0 %v1436_v16 }
 0x292   : > { %v1243_v28 = vpop.f32.mrf.mxu1 }
 0x294   : > { %v1244_v30 = vpop.f32.mrf.mxu1 }
 0x295   : > { %v1245_v31 = vadd.f32 %v1244_v30, %v1243_v28 }
 0x296   : > { %v1246_v32 = vpop.f32.mrf.mxu1 }
 0x297   : > { %v928_v22 = vadd.f32 %v1245_v31, %v560_v29 }
 0x298   : > { %v1247_v23 = vpop.f32.mrf.mxu1 }
 0x299   : > { %v1219_v33 = vpack.c.bf16 %v928_v22, %v928_v22  ;;  %v1248_v34 = vadd.f32 %v1247_v23, %v1246_v32 }
 0x29a   : > { %v1249_v35 = vpop.f32.mrf.mxu1 }
 0x29b   : > { %983 = vst [vmem:[%s1832_s9 + $0x8] sm:$0xf] %v1219_v33  ;;  %v931_v36 = vadd.f32 %v1248_v34, %v560_v29 }
 0x29c   : > { %v1250_v37 = vpop.f32.mrf.mxu1 }
 0x29d   : > { %v1221_v38 = vpack.c.bf16 %v931_v36, %v931_v36  ;;  %v1251_v39 = vadd.f32 %v1250_v37, %v1249_v35 }
 0x29e   : > { %v1252_v40 = vpop.f32.mrf.mxu1 }
 0x29f   : > { %985 = vst [vmem:[%s1832_s9 + $0x14] sm:$0xf] %v1221_v38  ;;  %v936_v41 = vadd.f32 %v1251_v39, %v560_v29 }
 0x2a0   : > { %v1253_v42 = vpop.f32.mrf.mxu1 }
 0x2a1   : > { %v1223_v43 = vpack.c.bf16 %v936_v41, %v936_v41  ;;  %v1254_v44 = vadd.f32 %v1253_v42, %v1252_v40 }
 0x2a3   : > { %987 = vst [vmem:[%s1832_s9 + $0x20] sm:$0xf] %v1223_v43  ;;  %v939_v47 = vadd.f32 %v1254_v44, %v560_v29 }
 0x2a5   : > { %v1225_v48 = vpack.c.bf16 %v939_v47, %v939_v47 }
 0x2a7   : > { %989 = vst [vmem:[%s1832_s9 + $0x2c] sm:$0xf] %v1225_v48 }
 0x2af   : > { %v874_v51 = vpop.f32.mrf.mxu0 }
 0x2b0   : > { %v875_v53 = vadd.f32 %v874_v51, %v552_v49 }
 0x2b1   : > { %v876_v52 = vpop.f32.mrf.mxu0 }
 0x2b2   : > { %v877_v54 = vadd.f32 %v876_v52, %v556_v50 }
 0x2b3   : > { %v878_v55 = vpop.f32.mrf.mxu0 }
 0x2b4   : > { %v1218_v56 = vpack.c.bf16 %v877_v54, %v875_v53  ;;  %v879_v58 = vadd.f32 %v878_v55, %v552_v49 }
 0x2b5   : > { %v880_v57 = vpop.f32.mrf.mxu0 }
 0x2b6   : > { %982 = vst [vmem:[%s1832_s9] sm:$0xff] %v1218_v56  ;;  %v881_v59 = vadd.f32 %v880_v57, %v556_v50 }
 0x2b7   : > { %v884_v60 = vpop.f32.mrf.mxu0 }
 0x2b8   : > { %v1220_v61 = vpack.c.bf16 %v881_v59, %v879_v58  ;;  %v885_v63 = vadd.f32 %v884_v60, %v552_v49 }
 0x2b9   : > { %v886_v62 = vpop.f32.mrf.mxu0 }
 0x2ba   : > { %984 = vst [vmem:[%s1832_s9 + $0xc] sm:$0xff] %v1220_v61  ;;  %v887_v0 = vadd.f32 %v886_v62, %v556_v50 }
 0x2bb   : > { %v888_v1 = vpop.f32.mrf.mxu0 }
 0x2bc   : > { %v1222_v2 = vpack.c.bf16 %v887_v0, %v885_v63  ;;  %v889_v4 = vadd.f32 %v888_v1, %v552_v49 }
 0x2bd   : > { %v890_v3 = vpop.f32.mrf.mxu0 }
 0x2be   : > { %986 = vst [vmem:[%s1832_s9 + $0x18] sm:$0xff] %v1222_v2  ;;  %v891_v5 = vadd.f32 %v890_v3, %v556_v50 }
 0x2c0   : > { %v1224_v6 = vpack.c.bf16 %v891_v5, %v889_v4 }
 0x2c2   : > { %988 = vst [vmem:[%s1832_s9 + $0x24] sm:$0xff] %v1224_v6 }
 0x2c3   : > { %1556 = shalt.err (!%p1553_p8)
}
 0x2c4   : > { %s1557_s10 = scalar_lea.hbm %s1910_s26, 768  ;;  %s1561_s8 = scalar_lea.hbm %s1966_s5, 1536 }
 0x2c5   : > { %p1558_p9 = scmp.ne.s32.totalorder %s1910_s26, %s1557_s10  ;;  %p1562_p4 = scmp.lt.s32.totalorder %s1910_s26, %s1966_s5 }
 0x2c6   : > { %p1563_p11 = scmp.lt.s32.totalorder %s1561_s8, %s1557_s10 }
 0x2c7   : > { %p1559_p12 = pnand %p1558_p9, %p1991_p1 }
 0x2c8   : > { %p1564_p6 = por %p1563_p11, %p1562_p4 }
 0x2c9   : > { %p1560_p13 = pneg %p1559_p12 }
 0x2cb   : > { %p1565_p2 = pnand %p1564_p6, %p1560_p13 }
 0x2cd   : > { %1568 = shalt.err (!%p1565_p2)
}
 0x2ce   : > { %s1643_s29 = smov 192   ;;  %s1644_s15 = smov 384  }
 0x2cf   : > { %s1645_s16 = smov 12  }
 0x2d0   : > { %1272 = dma.vmem_to_hbm [thread:$0]  (%p1991_p1), %s1912_s12, 768, %s1910_s26, %s991_s21, %s1643_s29, %s1644_s15, %s1645_s16  }
 0x2d1 PF: > { %s1022_s24 = sand.u32 1, %s1611_s18   ;;  %p1992_p0 = scmp.ne.s32.totalorder %s1980_s6, 0 }
 0x2d2   : > { %p1993_p10 = scmp.ge.s32.totalorder %s1631_s23, 2  ;;  %s1023_s25 = scalar_lea.sflag [#allocation5], %s1022_s24 }
 0x2d4   : > { %p1289_p5 = pnand %p1993_p10, %p1992_p0 }
 0x2d6   : > { %p1290_p7 = pneg %p1289_p5 }
 0x2d8   : > { %1606 = dma.done.wait (%p1290_p7), %s1023_s25, 768  }
 0x2d9   : > { %1608 = vsyncadd (%p1290_p7), %s1023_s25, 4294966528  ;;  %s23_s23 = sadd.s32 1, %s1631_s23   ;;  %s1994_s18 = smov %s1615_s19 }
 0x2da   : > { %p20_p3 = scmp.ge.s32.totalorder %s23_s23, 4   ;;  %s1995_s19 = smov %s1619_s20 }
 0x2db   : > { %s1996_s20 = smov %s1797_s17  ;;  %s1997_s21 = smov %s1627_s22 }
 0x2dc   : > { %s1998_s22 = smov %s2000_s14  ;;  %22 = sbr.rel (!%p20_p3) target bundleno = 12 (0xc), region = 106 }
 0x2e1   :  { %1028 = vsyncpa [#allocation4], 1 }
 0x2e2   :  { %1030 = vsyncpa [#allocation4 + $0x1], 1 }
 0x2e3   :  { %1031 = vsyncpa [#allocation7], 1 }
 0x2e4   :  { %1032 = vsyncpa [#allocation10], 1 }
 0x2e5   :  { %1034 = vsyncpa [#allocation10 + $0x1], 1 }
 0x2e6   :  { %1035 = vsyncpa [#allocation5], 1 }
 0x2e7   :  { %1037 = vsyncpa [#allocation5 + $0x1], 1 }

</bundles_post_ra>
